<compile_context>
chip_gen: v5e
topology: v5e:2x2
jax: 0.10.0
libtpu: 0.0.40
codegen_flags: <defaults>
</compile_context>

<pallas_src>
import functools

import jax
import jax.numpy as jnp
from jax.experimental import pallas as pl
from jax.experimental.pallas import tpu as pltpu


_LANE = 128


def _round_up(n, m):
    return ((n + m - 1) // m) * m


def _pad2(x, rows, cols):
    r, c = x.shape
    return jnp.pad(x, ((0, rows - r), (0, cols - c)))


# --------------------------------------------------------------------------
# Fully fused forward kernel: layer1 (GraphConv C->C, GraphConv C->N,
# SAGEConv N->N, 'sum' for dst 'N') -> ReLU -> layer2 (same relations).
# --------------------------------------------------------------------------
def _hgnn_fused_kernel(adj_cc_ref, adj_cn_ref, adj_nn_ref,      # bf16 [Nd, Ns] (0/1, transposed)
                       x_c_ref, x_n_ref,                        # f32  [NC, fin_p], [NN, fin_p]
                       norm_c_ref, norm_n_ref,                  # f32  [3, NC, 1], [2, NN, 1]
                       w_cc1_ref, w_cn1_ref, w_nn1_ref, b1_ref,  # layer-1 weights / [3,1,hid_p] bias
                       w_cc2_ref, w_cn2_ref, w_nn2_ref, b2_ref,  # layer-2 weights / [3,1,out_p] bias
                       out_c_ref, out_n_ref,                    # f32  [NC, out_p], [NN, out_p]
                       *, fin_p, hid_p):
    f32, bf16 = jnp.float32, jnp.bfloat16

    adj_cc = adj_cc_ref[...]
    adj_cn = adj_cn_ref[...]
    adj_nn = adj_nn_ref[...]

    # packed degree norms (precomputed once outside the kernel, reused by both layers)
    nsrc_cc = norm_c_ref[0]          # [NC, 1]  rsqrt(out_deg) of a_cc
    nsrc_cn = norm_c_ref[1]          # [NC, 1]  rsqrt(out_deg) of a_cn
    ndst_cc = norm_c_ref[2]          # [NC, 1]  rsqrt(in_deg)  of a_cc
    ndst_cn = norm_n_ref[0]          # [NN, 1]  rsqrt(in_deg)  of a_cn
    invdeg_nn = norm_n_ref[1]        # [NN, 1]  1/max(in_deg,1) of a_nn

    def hetero_layer(x_c, x_n, w_cc_ref, w_cn_ref, w_nn_ref, b_ref, fp, relu):
        # ---- GraphConv C->C: D_dst^-1/2 (A^T (D_src^-1/2 X_C)) W + b ---------
        agg = jnp.dot(adj_cc, (x_c * nsrc_cc).astype(bf16),
                      preferred_element_type=f32) * ndst_cc
        h_c = jnp.dot(agg.astype(bf16), w_cc_ref[...],
                      preferred_element_type=f32) + b_ref[0]

        # ---- GraphConv C->N ---------------------------------------------------
        agg = jnp.dot(adj_cn, (x_c * nsrc_cn).astype(bf16),
                      preferred_element_type=f32) * ndst_cn
        h_n = jnp.dot(agg.astype(bf16), w_cn_ref[...],
                      preferred_element_type=f32) + b_ref[1]

        # ---- SAGEConv N->N ('mean'): no concat — two tile-aligned weight slices
        x_n_bf = x_n.astype(bf16)                                   # cast once, reused
        mean_neigh = jnp.dot(adj_nn, x_n_bf,
                             preferred_element_type=f32) * invdeg_nn
        h_n = h_n + jnp.dot(x_n_bf, w_nn_ref[:fp, :],
                            preferred_element_type=f32)             # self proj
        h_n = h_n + jnp.dot(mean_neigh.astype(bf16), w_nn_ref[fp:, :],
                            preferred_element_type=f32)             # neighbor proj
        h_n = h_n + b_ref[2]                                        # 'sum' aggregate already folded

        if relu:
            h_c = jnp.maximum(h_c, 0.0)
            h_n = jnp.maximum(h_n, 0.0)
        return h_c, h_n

    # layer 1 (+ fused ReLU) — hidden activations stay in VMEM/vregs
    h_c, h_n = hetero_layer(x_c_ref[...], x_n_ref[...],
                            w_cc1_ref, w_cn1_ref, w_nn1_ref, b1_ref,
                            fin_p, relu=True)
    # layer 2
    o_c, o_n = hetero_layer(h_c, h_n,
                            w_cc2_ref, w_cn2_ref, w_nn2_ref, b2_ref,
                            hid_p, relu=False)
    out_c_ref[...] = o_c
    out_n_ref[...] = o_n


def hgnn_forward(params, graph, x_c_pad, x_n_pad):
    """Whole HGNN forward = ONE pallas_call. Inputs must be lane-padded
    (see prepare_features). Returns lane-padded outputs (slice outside)."""
    _, _, _, fin_p, hid_p, out_p = params["dims"]
    nc, nn_ = x_c_pad.shape[0], x_n_pad.shape[0]
    vmem = pl.BlockSpec(memory_space=pltpu.MemorySpace.VMEM)  # whole array in VMEM, no grid
    kernel = functools.partial(_hgnn_fused_kernel, fin_p=fin_p, hid_p=hid_p)
    l1, l2 = params["l1"], params["l2"]
    o_c, o_n = pl.pallas_call(
        kernel,
        in_specs=[vmem] * 15,
        out_specs=(vmem, vmem),
        out_shape=(jax.ShapeDtypeStruct((nc, out_p), jnp.float32),
                   jax.ShapeDtypeStruct((nn_, out_p), jnp.float32)),
    )(graph["adj_t_cc"], graph["adj_t_cn"], graph["adj_t_nn"],
      x_c_pad, x_n_pad,
      graph["norm_c"], graph["norm_n"],
      l1["w_cc"], l1["w_cn"], l1["w_nn"], l1["b"],
      l2["w_cc"], l2["w_cn"], l2["w_nn"], l2["b"])
    return {"C": o_c, "N": o_n}


# --------------------------------------------------------------------------
# Graph preprocessing (done once, reused by every forward)
# --------------------------------------------------------------------------
def prepare_graph(a_cc, a_cn, a_nn):
    """a_xy[src, dst] in {0,1} float32. Returns bf16 transposed adjacencies and
    packed f32 degree-norm arrays (degrees clamped >= 1, equivalent to DGL)."""
    def gc_norms(a):
        out_deg = jnp.maximum(jnp.sum(a, axis=1), 1.0)   # per-src out-degree
        in_deg = jnp.maximum(jnp.sum(a, axis=0), 1.0)    # per-dst in-degree
        return jax.lax.rsqrt(out_deg), jax.lax.rsqrt(in_deg)

    nsrc_cc, ndst_cc = gc_norms(a_cc)
    nsrc_cn, ndst_cn = gc_norms(a_cn)
    inv_deg_nn = 1.0 / jnp.maximum(jnp.sum(a_nn, axis=0), 1.0)

    # pack per node type: leading-axis indexed inside the kernel (ref[k] -> [N,1])
    norm_c = jnp.stack([nsrc_cc, nsrc_cn, ndst_cc], axis=0)[:, :, None]  # [3, NC, 1]
    norm_n = jnp.stack([ndst_cn, inv_deg_nn], axis=0)[:, :, None]        # [2, NN, 1]

    return dict(
        adj_t_cc=a_cc.T.astype(jnp.bfloat16),
        adj_t_cn=a_cn.T.astype(jnp.bfloat16),
        adj_t_nn=a_nn.T.astype(jnp.bfloat16),
        norm_c=norm_c, norm_n=norm_n,
    )


def prepare_features(params, feat_c, feat_n):
    """Lane-pad node features ONCE (hoisted out of the per-forward hot path)."""
    fin_p = params["dims"][3]
    return (_pad2(feat_c.astype(jnp.float32), feat_c.shape[0], fin_p),
            _pad2(feat_n.astype(jnp.float32), feat_n.shape[0], fin_p))


# --------------------------------------------------------------------------
# Parameters (stored zero-padded to lane-dense widths, matmul weights in bf16)
# --------------------------------------------------------------------------
def init_params(key, in_feats, hidden_feats, out_feats):
    fin_p = _round_up(in_feats, _LANE)
    hid_p = _round_up(hidden_feats, _LANE)
    out_p = _round_up(out_feats, _LANE)

    def lin(k, fi, fo, fi_p, fo_p):
        scale = 1.0 / jnp.sqrt(jnp.float32(fi))
        w = jax.random.normal(k, (fi, fo), jnp.float32) * scale
        return _pad2(w, fi_p, fo_p).astype(jnp.bfloat16)

    ks = jax.random.split(key, 8)

    def layer(k0, k1, k2, k3, fi, fo, fi_p, fo_p):
        return {
            "w_cc": lin(k0, fi, fo, fi_p, fo_p),
            "w_cn": lin(k1, fi, fo, fi_p, fo_p),
            # SAGE: stacked [W_self; W_neigh] -> sliced at the fi_p (128-mult) boundary in-kernel
            "w_nn": jnp.concatenate([lin(k2, fi, fo, fi_p, fo_p),
                                     lin(k3, fi, fo, fi_p, fo_p)], axis=0),
            # packed biases, rows = [b_cc, b_cn, b_nn] (DGL initializes biases to zero)
            "b": jnp.zeros((3, 1, fo_p), jnp.float32),
        }

    return {
        "l1": layer(ks[0], ks[1], ks[2], ks[3], in_feats, hidden_feats, fin_p, hid_p),
        "l2": layer(ks[4], ks[5], ks[6], ks[7], hidden_feats, out_feats, hid_p, out_p),
        "dims": (in_feats, hidden_feats, out_feats, fin_p, hid_p, out_p),
    }


# --------------------------------------------------------------------------
if __name__ == "__main__":
    key = jax.random.PRNGKey(0)
    k_adj1, k_adj2, k_adj3, k_fc, k_fn, k_par = jax.random.split(key, 6)

    # small heterograph: 16 'C' nodes, 24 'N' nodes
    NC, NN = 16, 24
    IN_FEATS, HIDDEN_FEATS, OUT_FEATS = 8, 32, 16

    # adjacency A[src, dst] in {0,1}
    a_cc = (jax.random.uniform(k_adj1, (NC, NC)) < 0.3).astype(jnp.float32)
    a_cn = (jax.random.uniform(k_adj2, (NC, NN)) < 0.3).astype(jnp.float32)
    a_nn = (jax.random.uniform(k_adj3, (NN, NN)) < 0.3).astype(jnp.float32)

    feat_c = jax.random.normal(k_fc, (NC, IN_FEATS), jnp.float32)
    feat_n = jax.random.normal(k_fn, (NN, IN_FEATS), jnp.float32)

    graph = prepare_graph(a_cc, a_cn, a_nn)
    params = init_params(k_par, IN_FEATS, HIDDEN_FEATS, OUT_FEATS)
    x_c_pad, x_n_pad = prepare_features(params, feat_c, feat_n)

    # hot path: exactly ONE pallas_call
    out = hgnn_forward(params, graph, x_c_pad, x_n_pad)
    jax.block_until_ready(out)

    # un-pad once, outside the hot path
    out_c = out["C"][:, :OUT_FEATS]
    out_n = out["N"][:, :OUT_FEATS]
    assert out_c.shape == (NC, OUT_FEATS)
    assert out_n.shape == (NN, OUT_FEATS)
    print("KERNEL_OK")
</pallas_src>

<mosaic_0001>
module attributes {stable_mosaic.version = 11 : i64} {
  func.func @_hgnn_fused_kernel(%arg0: memref<16x16xbf16, #tpu.memory_space<vmem>>, %arg1: memref<24x16xbf16, #tpu.memory_space<vmem>>, %arg2: memref<24x24xbf16, #tpu.memory_space<vmem>>, %arg3: memref<16x128xf32, #tpu.memory_space<vmem>>, %arg4: memref<24x128xf32, #tpu.memory_space<vmem>>, %arg5: memref<3x16x1xf32, #tpu.memory_space<vmem>>, %arg6: memref<2x24x1xf32, #tpu.memory_space<vmem>>, %arg7: memref<128x128xbf16, #tpu.memory_space<vmem>>, %arg8: memref<128x128xbf16, #tpu.memory_space<vmem>>, %arg9: memref<256x128xbf16, #tpu.memory_space<vmem>>, %arg10: memref<3x1x128xf32, #tpu.memory_space<vmem>>, %arg11: memref<128x128xbf16, #tpu.memory_space<vmem>>, %arg12: memref<128x128xbf16, #tpu.memory_space<vmem>>, %arg13: memref<256x128xbf16, #tpu.memory_space<vmem>>, %arg14: memref<3x1x128xf32, #tpu.memory_space<vmem>>, %arg15: memref<16x128xf32, #tpu.memory_space<vmem>>, %arg16: memref<24x128xf32, #tpu.memory_space<vmem>>) attributes {dimension_semantics = [], scalar_prefetch = 0 : i64, scratch_operands = 0 : i64, tpu.core_type = #tpu.core_type<tc>} {
    %c0 = arith.constant 0 : index
    %c0_0 = arith.constant 0 : index
    %0 = vector.load %arg0[%c0, %c0_0] : memref<16x16xbf16, #tpu.memory_space<vmem>>, vector<16x16xbf16>
    %c0_1 = arith.constant 0 : index
    %c0_2 = arith.constant 0 : index
    %1 = vector.load %arg1[%c0_1, %c0_2] : memref<24x16xbf16, #tpu.memory_space<vmem>>, vector<24x16xbf16>
    %c0_3 = arith.constant 0 : index
    %c0_4 = arith.constant 0 : index
    %2 = vector.load %arg2[%c0_3, %c0_4] : memref<24x24xbf16, #tpu.memory_space<vmem>>, vector<24x24xbf16>
    %c0_5 = arith.constant 0 : index
    %c0_6 = arith.constant 0 : index
    %c0_7 = arith.constant 0 : index
    %3 = vector.load %arg5[%c0_5, %c0_6, %c0_7] : memref<3x16x1xf32, #tpu.memory_space<vmem>>, vector<1x16x1xf32>
    %4 = vector.shape_cast %3 : vector<1x16x1xf32> to vector<16x1xf32>
    %c1 = arith.constant 1 : index
    %c0_8 = arith.constant 0 : index
    %c0_9 = arith.constant 0 : index
    %5 = vector.load %arg5[%c1, %c0_8, %c0_9] : memref<3x16x1xf32, #tpu.memory_space<vmem>>, vector<1x16x1xf32>
    %6 = vector.shape_cast %5 : vector<1x16x1xf32> to vector<16x1xf32>
    %c2 = arith.constant 2 : index
    %c0_10 = arith.constant 0 : index
    %c0_11 = arith.constant 0 : index
    %7 = vector.load %arg5[%c2, %c0_10, %c0_11] : memref<3x16x1xf32, #tpu.memory_space<vmem>>, vector<1x16x1xf32>
    %8 = vector.shape_cast %7 : vector<1x16x1xf32> to vector<16x1xf32>
    %c0_12 = arith.constant 0 : index
    %c0_13 = arith.constant 0 : index
    %c0_14 = arith.constant 0 : index
    %9 = vector.load %arg6[%c0_12, %c0_13, %c0_14] : memref<2x24x1xf32, #tpu.memory_space<vmem>>, vector<1x24x1xf32>
    %10 = vector.shape_cast %9 : vector<1x24x1xf32> to vector<24x1xf32>
    %c1_15 = arith.constant 1 : index
    %c0_16 = arith.constant 0 : index
    %c0_17 = arith.constant 0 : index
    %11 = vector.load %arg6[%c1_15, %c0_16, %c0_17] : memref<2x24x1xf32, #tpu.memory_space<vmem>>, vector<1x24x1xf32>
    %12 = vector.shape_cast %11 : vector<1x24x1xf32> to vector<24x1xf32>
    %c0_18 = arith.constant 0 : index
    %c0_19 = arith.constant 0 : index
    %13 = vector.load %arg3[%c0_18, %c0_19] : memref<16x128xf32, #tpu.memory_space<vmem>>, vector<16x128xf32>
    %c0_20 = arith.constant 0 : index
    %c0_21 = arith.constant 0 : index
    %14 = vector.load %arg4[%c0_20, %c0_21] : memref<24x128xf32, #tpu.memory_space<vmem>>, vector<24x128xf32>
    %15 = vector.broadcast %4 : vector<16x1xf32> to vector<16x128xf32>
    %16 = arith.mulf %13, %15 : vector<16x128xf32>
    %17 = arith.truncf %16 : vector<16x128xf32> to vector<16x128xbf16>
    %cst = arith.constant dense<0.000000e+00> : vector<16x128xf32>
    %18 = tpu.matmul %0, %17, %cst {dimension_numbers = #tpu.dot_dimension_numbers<[1], [0], [0], [1], [0, 0, 1, 1], [], []>} : vector<16x16xbf16>, vector<16x128xbf16>, vector<16x128xf32> -> vector<16x128xf32>
    %19 = vector.broadcast %8 : vector<16x1xf32> to vector<16x128xf32>
    %20 = arith.mulf %18, %19 : vector<16x128xf32>
    %21 = arith.truncf %20 : vector<16x128xf32> to vector<16x128xbf16>
    %c0_22 = arith.constant 0 : index
    %c0_23 = arith.constant 0 : index
    %22 = vector.load %arg7[%c0_22, %c0_23] : memref<128x128xbf16, #tpu.memory_space<vmem>>, vector<128x128xbf16>
    %cst_24 = arith.constant dense<0.000000e+00> : vector<16x128xf32>
    %23 = tpu.matmul %21, %22, %cst_24 {dimension_numbers = #tpu.dot_dimension_numbers<[1], [0], [0], [1], [0, 0, 1, 1], [], []>} : vector<16x128xbf16>, vector<128x128xbf16>, vector<16x128xf32> -> vector<16x128xf32>
    %c0_25 = arith.constant 0 : index
    %c0_26 = arith.constant 0 : index
    %c0_27 = arith.constant 0 : index
    %24 = vector.load %arg10[%c0_25, %c0_26, %c0_27] : memref<3x1x128xf32, #tpu.memory_space<vmem>>, vector<1x1x128xf32>
    %25 = vector.shape_cast %24 : vector<1x1x128xf32> to vector<1x128xf32>
    %26 = vector.broadcast %25 : vector<1x128xf32> to vector<16x128xf32>
    %27 = arith.addf %23, %26 : vector<16x128xf32>
    %28 = vector.broadcast %6 : vector<16x1xf32> to vector<16x128xf32>
    %29 = arith.mulf %13, %28 : vector<16x128xf32>
    %30 = arith.truncf %29 : vector<16x128xf32> to vector<16x128xbf16>
    %cst_28 = arith.constant dense<0.000000e+00> : vector<24x128xf32>
    %31 = tpu.matmul %1, %30, %cst_28 {dimension_numbers = #tpu.dot_dimension_numbers<[1], [0], [0], [1], [0, 0, 1, 1], [], []>} : vector<24x16xbf16>, vector<16x128xbf16>, vector<24x128xf32> -> vector<24x128xf32>
    %32 = vector.broadcast %10 : vector<24x1xf32> to vector<24x128xf32>
    %33 = arith.mulf %31, %32 : vector<24x128xf32>
    %34 = arith.truncf %33 : vector<24x128xf32> to vector<24x128xbf16>
    %c0_29 = arith.constant 0 : index
    %c0_30 = arith.constant 0 : index
    %35 = vector.load %arg8[%c0_29, %c0_30] : memref<128x128xbf16, #tpu.memory_space<vmem>>, vector<128x128xbf16>
    %cst_31 = arith.constant dense<0.000000e+00> : vector<24x128xf32>
    %36 = tpu.matmul %34, %35, %cst_31 {dimension_numbers = #tpu.dot_dimension_numbers<[1], [0], [0], [1], [0, 0, 1, 1], [], []>} : vector<24x128xbf16>, vector<128x128xbf16>, vector<24x128xf32> -> vector<24x128xf32>
    %c1_32 = arith.constant 1 : index
    %c0_33 = arith.constant 0 : index
    %c0_34 = arith.constant 0 : index
    %37 = vector.load %arg10[%c1_32, %c0_33, %c0_34] : memref<3x1x128xf32, #tpu.memory_space<vmem>>, vector<1x1x128xf32>
    %38 = vector.shape_cast %37 : vector<1x1x128xf32> to vector<1x128xf32>
    %39 = vector.broadcast %38 : vector<1x128xf32> to vector<24x128xf32>
    %40 = arith.addf %36, %39 : vector<24x128xf32>
    %41 = arith.truncf %14 : vector<24x128xf32> to vector<24x128xbf16>
    %cst_35 = arith.constant dense<0.000000e+00> : vector<24x128xf32>
    %42 = tpu.matmul %2, %41, %cst_35 {dimension_numbers = #tpu.dot_dimension_numbers<[1], [0], [0], [1], [0, 0, 1, 1], [], []>} : vector<24x24xbf16>, vector<24x128xbf16>, vector<24x128xf32> -> vector<24x128xf32>
    %43 = vector.broadcast %12 : vector<24x1xf32> to vector<24x128xf32>
    %44 = arith.mulf %42, %43 : vector<24x128xf32>
    %c0_36 = arith.constant 0 : index
    %c0_37 = arith.constant 0 : index
    %45 = vector.load %arg9[%c0_36, %c0_37] : memref<256x128xbf16, #tpu.memory_space<vmem>>, vector<128x128xbf16>
    %cst_38 = arith.constant dense<0.000000e+00> : vector<24x128xf32>
    %46 = tpu.matmul %41, %45, %cst_38 {dimension_numbers = #tpu.dot_dimension_numbers<[1], [0], [0], [1], [0, 0, 1, 1], [], []>} : vector<24x128xbf16>, vector<128x128xbf16>, vector<24x128xf32> -> vector<24x128xf32>
    %47 = arith.addf %40, %46 : vector<24x128xf32>
    %48 = arith.truncf %44 : vector<24x128xf32> to vector<24x128xbf16>
    %c128 = arith.constant 128 : index
    %c0_39 = arith.constant 0 : index
    %49 = vector.load %arg9[%c128, %c0_39] : memref<256x128xbf16, #tpu.memory_space<vmem>>, vector<128x128xbf16>
    %cst_40 = arith.constant dense<0.000000e+00> : vector<24x128xf32>
    %50 = tpu.matmul %48, %49, %cst_40 {dimension_numbers = #tpu.dot_dimension_numbers<[1], [0], [0], [1], [0, 0, 1, 1], [], []>} : vector<24x128xbf16>, vector<128x128xbf16>, vector<24x128xf32> -> vector<24x128xf32>
    %51 = arith.addf %47, %50 : vector<24x128xf32>
    %c2_41 = arith.constant 2 : index
    %c0_42 = arith.constant 0 : index
    %c0_43 = arith.constant 0 : index
    %52 = vector.load %arg10[%c2_41, %c0_42, %c0_43] : memref<3x1x128xf32, #tpu.memory_space<vmem>>, vector<1x1x128xf32>
    %53 = vector.shape_cast %52 : vector<1x1x128xf32> to vector<1x128xf32>
    %54 = vector.broadcast %53 : vector<1x128xf32> to vector<24x128xf32>
    %55 = arith.addf %51, %54 : vector<24x128xf32>
    %cst_44 = arith.constant 0.000000e+00 : f32
    %56 = vector.broadcast %cst_44 : f32 to vector<16x128xf32>
    %57 = arith.maximumf %27, %56 : vector<16x128xf32>
    %cst_45 = arith.constant 0.000000e+00 : f32
    %58 = vector.broadcast %cst_45 : f32 to vector<24x128xf32>
    %59 = arith.maximumf %55, %58 : vector<24x128xf32>
    %60 = vector.broadcast %4 : vector<16x1xf32> to vector<16x128xf32>
    %61 = arith.mulf %57, %60 : vector<16x128xf32>
    %62 = arith.truncf %61 : vector<16x128xf32> to vector<16x128xbf16>
    %cst_46 = arith.constant dense<0.000000e+00> : vector<16x128xf32>
    %63 = tpu.matmul %0, %62, %cst_46 {dimension_numbers = #tpu.dot_dimension_numbers<[1], [0], [0], [1], [0, 0, 1, 1], [], []>} : vector<16x16xbf16>, vector<16x128xbf16>, vector<16x128xf32> -> vector<16x128xf32>
    %64 = vector.broadcast %8 : vector<16x1xf32> to vector<16x128xf32>
    %65 = arith.mulf %63, %64 : vector<16x128xf32>
    %66 = arith.truncf %65 : vector<16x128xf32> to vector<16x128xbf16>
    %c0_47 = arith.constant 0 : index
    %c0_48 = arith.constant 0 : index
    %67 = vector.load %arg11[%c0_47, %c0_48] : memref<128x128xbf16, #tpu.memory_space<vmem>>, vector<128x128xbf16>
    %cst_49 = arith.constant dense<0.000000e+00> : vector<16x128xf32>
    %68 = tpu.matmul %66, %67, %cst_49 {dimension_numbers = #tpu.dot_dimension_numbers<[1], [0], [0], [1], [0, 0, 1, 1], [], []>} : vector<16x128xbf16>, vector<128x128xbf16>, vector<16x128xf32> -> vector<16x128xf32>
    %c0_50 = arith.constant 0 : index
    %c0_51 = arith.constant 0 : index
    %c0_52 = arith.constant 0 : index
    %69 = vector.load %arg14[%c0_50, %c0_51, %c0_52] : memref<3x1x128xf32, #tpu.memory_space<vmem>>, vector<1x1x128xf32>
    %70 = vector.shape_cast %69 : vector<1x1x128xf32> to vector<1x128xf32>
    %71 = vector.broadcast %70 : vector<1x128xf32> to vector<16x128xf32>
    %72 = arith.addf %68, %71 : vector<16x128xf32>
    %73 = vector.broadcast %6 : vector<16x1xf32> to vector<16x128xf32>
    %74 = arith.mulf %57, %73 : vector<16x128xf32>
    %75 = arith.truncf %74 : vector<16x128xf32> to vector<16x128xbf16>
    %cst_53 = arith.constant dense<0.000000e+00> : vector<24x128xf32>
    %76 = tpu.matmul %1, %75, %cst_53 {dimension_numbers = #tpu.dot_dimension_numbers<[1], [0], [0], [1], [0, 0, 1, 1], [], []>} : vector<24x16xbf16>, vector<16x128xbf16>, vector<24x128xf32> -> vector<24x128xf32>
    %77 = vector.broadcast %10 : vector<24x1xf32> to vector<24x128xf32>
    %78 = arith.mulf %76, %77 : vector<24x128xf32>
    %79 = arith.truncf %78 : vector<24x128xf32> to vector<24x128xbf16>
    %c0_54 = arith.constant 0 : index
    %c0_55 = arith.constant 0 : index
    %80 = vector.load %arg12[%c0_54, %c0_55] : memref<128x128xbf16, #tpu.memory_space<vmem>>, vector<128x128xbf16>
    %cst_56 = arith.constant dense<0.000000e+00> : vector<24x128xf32>
    %81 = tpu.matmul %79, %80, %cst_56 {dimension_numbers = #tpu.dot_dimension_numbers<[1], [0], [0], [1], [0, 0, 1, 1], [], []>} : vector<24x128xbf16>, vector<128x128xbf16>, vector<24x128xf32> -> vector<24x128xf32>
    %c1_57 = arith.constant 1 : index
    %c0_58 = arith.constant 0 : index
    %c0_59 = arith.constant 0 : index
    %82 = vector.load %arg14[%c1_57, %c0_58, %c0_59] : memref<3x1x128xf32, #tpu.memory_space<vmem>>, vector<1x1x128xf32>
    %83 = vector.shape_cast %82 : vector<1x1x128xf32> to vector<1x128xf32>
    %84 = vector.broadcast %83 : vector<1x128xf32> to vector<24x128xf32>
    %85 = arith.addf %81, %84 : vector<24x128xf32>
    %86 = arith.truncf %59 : vector<24x128xf32> to vector<24x128xbf16>
    %cst_60 = arith.constant dense<0.000000e+00> : vector<24x128xf32>
    %87 = tpu.matmul %2, %86, %cst_60 {dimension_numbers = #tpu.dot_dimension_numbers<[1], [0], [0], [1], [0, 0, 1, 1], [], []>} : vector<24x24xbf16>, vector<24x128xbf16>, vector<24x128xf32> -> vector<24x128xf32>
    %88 = vector.broadcast %12 : vector<24x1xf32> to vector<24x128xf32>
    %89 = arith.mulf %87, %88 : vector<24x128xf32>
    %c0_61 = arith.constant 0 : index
    %c0_62 = arith.constant 0 : index
    %90 = vector.load %arg13[%c0_61, %c0_62] : memref<256x128xbf16, #tpu.memory_space<vmem>>, vector<128x128xbf16>
    %cst_63 = arith.constant dense<0.000000e+00> : vector<24x128xf32>
    %91 = tpu.matmul %86, %90, %cst_63 {dimension_numbers = #tpu.dot_dimension_numbers<[1], [0], [0], [1], [0, 0, 1, 1], [], []>} : vector<24x128xbf16>, vector<128x128xbf16>, vector<24x128xf32> -> vector<24x128xf32>
    %92 = arith.addf %85, %91 : vector<24x128xf32>
    %93 = arith.truncf %89 : vector<24x128xf32> to vector<24x128xbf16>
    %c128_64 = arith.constant 128 : index
    %c0_65 = arith.constant 0 : index
    %94 = vector.load %arg13[%c128_64, %c0_65] : memref<256x128xbf16, #tpu.memory_space<vmem>>, vector<128x128xbf16>
    %cst_66 = arith.constant dense<0.000000e+00> : vector<24x128xf32>
    %95 = tpu.matmul %93, %94, %cst_66 {dimension_numbers = #tpu.dot_dimension_numbers<[1], [0], [0], [1], [0, 0, 1, 1], [], []>} : vector<24x128xbf16>, vector<128x128xbf16>, vector<24x128xf32> -> vector<24x128xf32>
    %96 = arith.addf %92, %95 : vector<24x128xf32>
    %c2_67 = arith.constant 2 : index
    %c0_68 = arith.constant 0 : index
    %c0_69 = arith.constant 0 : index
    %97 = vector.load %arg14[%c2_67, %c0_68, %c0_69] : memref<3x1x128xf32, #tpu.memory_space<vmem>>, vector<1x1x128xf32>
    %98 = vector.shape_cast %97 : vector<1x1x128xf32> to vector<1x128xf32>
    %99 = vector.broadcast %98 : vector<1x128xf32> to vector<24x128xf32>
    %100 = arith.addf %96, %99 : vector<24x128xf32>
    %c0_70 = arith.constant 0 : index
    %c0_71 = arith.constant 0 : index
    %101 = vector.load %arg15[%c0_70, %c0_71] : memref<16x128xf32, #tpu.memory_space<vmem>>, vector<16x128xf32>
    tpu.vector_store %arg15[%c0_70, %c0_71], %72 {strides = array<i32>} : memref<16x128xf32, #tpu.memory_space<vmem>>, vector<16x128xf32>,
    %c0_72 = arith.constant 0 : index
    %c0_73 = arith.constant 0 : index
    %102 = vector.load %arg16[%c0_72, %c0_73] : memref<24x128xf32, #tpu.memory_space<vmem>>, vector<24x128xf32>
    tpu.vector_store %arg16[%c0_72, %c0_73], %100 {strides = array<i32>} : memref<24x128xf32, #tpu.memory_space<vmem>>, vector<24x128xf32>,
    return
  }
}

</mosaic_0001>

<bundles_post_ra>
// kernel: tpu_custom_call.1
= control target key start
LH: loop header
LB: loop body
LE: loop exit
PB: predicated region body
PF: predicated region fallthrough
CT: control target
= control target key end

     0   :  { %s2106_s0 = inlined_call_operand.hbm [shape: bf16[16,16], index: 0, kind: input, shape index: {}]   ;;  %s2107_s1 = inlined_call_operand.vmem [shape: bf16[24,16], index: 1, kind: input, shape index: {}]   ;;  %s2108_s2 = inlined_call_operand.vmem [shape: bf16[24,24], index: 2, kind: input, shape index: {}]   ;;  %s2109_s3 = inlined_call_operand.vmem [shape: f32[16,128], index: 3, kind: input, shape index: {}]   ;;  %s2110_s4 = inlined_call_operand.vmem [shape: f32[24,128], index: 4, kind: input, shape index: {}]   ;;  %s2111_s5 = inlined_call_operand.vmem [shape: f32[3,16,1], index: 5, kind: input, shape index: {}]   ;;  %s2112_s6 = inlined_call_operand.vmem [shape: f32[2,24,1], index: 6, kind: input, shape index: {}]   ;;  %s2113_s7 = inlined_call_operand.vmem [shape: bf16[128,128], index: 7, kind: input, shape index: {}]   ;;  %s2114_s8 = inlined_call_operand.hbm [shape: bf16[128,128], index: 8, kind: input, shape index: {}]   ;;  %s2115_s9 = inlined_call_operand.hbm [shape: bf16[256,128], index: 9, kind: input, shape index: {}]   ;;  %s2116_s10 = inlined_call_operand.vmem [shape: f32[3,1,128], index: 10, kind: input, shape index: {}]   ;;  %s2117_s11 = inlined_call_operand.hbm [shape: bf16[128,128], index: 11, kind: input, shape index: {}]   ;;  %s2118_s12 = inlined_call_operand.hbm [shape: bf16[128,128], index: 12, kind: input, shape index: {}]   ;;  %s2119_s13 = inlined_call_operand.hbm [shape: bf16[256,128], index: 13, kind: input, shape index: {}]   ;;  %s2120_s14 = inlined_call_operand.vmem [shape: f32[3,1,128], index: 14, kind: input, shape index: {}]   ;;  %s2121_s15 = inlined_call_operand.hbm [shape: f32[16,128], index: 15, kind: output, shape index: {0}]   ;;  %s2122_s16 = inlined_call_operand.hbm [shape: f32[24,128], index: 16, kind: output, shape index: {1}]  }
   0x1   :  { %2123 = sst [smem:[#allocation22_spill]] %s2106_s0 }
   0x2   :  { %22 = vsyncpa [#allocation3], 0 }
   0x3   :  { %23 = vsyncpa [#allocation6], 0 }
   0x4   :  { %24 = vsyncpa [#allocation9], 0 }
   0x5   :  { %25 = vsyncpa [#allocation12], 0 }
   0x6   :  { %26 = vsyncpa [#allocation4], 0 }
   0x7   :  { %27 = vsyncpa [#allocation15], 0  ;;  %s59_s23 = sshll.u32 %s2114_s8, 4  ;;  %s1758_s24 = smov [#allocation5]   ;;  %s60_s23 = int_to_ptr.hbm [resolvable:$true] %s59_s23 }
   0x8   :  { %s61_s25 = sshll.u32 %s1758_s24, 4  ;;  %s87_s28 = sshll.u32 %s2117_s11, 4  ;;  %s62_s25 = int_to_ptr.vmem [resolvable:$true] %s61_s25  ;;  %s88_s28 = int_to_ptr.hbm [resolvable:$true] %s87_s28 }
   0x9   :  { %s1759_s29 = smov 64   ;;  %s1760_s30 = smov 4  }
   0xa   :  { %67 = dma.hbm_to_vmem [thread:$0]  %s60_s23, 1024, %s62_s25, [#allocation6], %s1759_s29, %s1759_s29, %s1760_s30  }
   0xb   :  { %s1761_s0 = smov [#allocation8]   ;;  %s2124_s8 = sld [smem:[#allocation22_spill]] }
   0xc   :  { %s89_s17 = sshll.u32 %s1761_s0, 4  ;;  %s72_s22 = sshll.u32 %s2115_s9, 4  ;;  %s90_s17 = int_to_ptr.vmem [resolvable:$true] %s89_s17  ;;  %s73_s22 = int_to_ptr.hbm [resolvable:$true] %s72_s22 }
   0xd   :  { %95 = dma.hbm_to_vmem [thread:$0]  %s88_s28, 1024, %s90_s17, [#allocation9], %s1759_s29, %s1759_s29, %s1760_s30  }
   0xe   :  { %s1762_s24 = smov [#allocation2]   ;;  %s1763_s23 = smov [#allocation7]  }
   0xf   :  { %s34_s26 = sshll.u32 %s1762_s24, 4  ;;  %s74_s25 = sshll.u32 %s1763_s23, 4  ;;  %s35_s26 = int_to_ptr.vmem [resolvable:$true] %s34_s26  ;;  %s75_s25 = int_to_ptr.vmem [resolvable:$true] %s74_s25 }
  0x10   :  { %s100_s18 = sshll.u32 %s2118_s12, 4  ;;  %s113_s17 = sshll.u32 %s2119_s13, 4  ;;  %s101_s18 = int_to_ptr.hbm [resolvable:$true] %s100_s18  ;;  %s114_s17 = int_to_ptr.hbm [resolvable:$true] %s113_s17 }
  0x11   :  { %s32_s20 = sshll.u32 %s2124_s8, 4  ;;  %s1764_s19 = smov [#allocation10]   ;;  %s33_s20 = int_to_ptr.hbm [resolvable:$true] %s32_s20 }
  0x12   :  { %40 = dma.hbm_to_vmem [thread:$0]  %s33_s20, 128, %s35_s26, [#allocation3], %s1759_s29, %s1759_s29, %s1760_s30  }
  0x13   :  { %80 = dma.hbm_to_vmem [thread:$0]  %s73_s22, 2048, %s75_s25, [#allocation6], %s1759_s29, %s1759_s29, %s1760_s30  }
  0x14   :  { %s102_s8 = sshll.u32 %s1764_s19, 4  ;;  %s1765_s20 = smov [#allocation11]   ;;  %s103_s8 = int_to_ptr.vmem [resolvable:$true] %s102_s8 }
  0x15   :  { %108 = dma.hbm_to_vmem [thread:$0]  %s101_s18, 1024, %s103_s8, [#allocation9], %s1759_s29, %s1759_s29, %s1760_s30  }
  0x16   :  { %s115_s12 = sshll.u32 %s1765_s20, 4  ;;  %s116_s12 = int_to_ptr.vmem [resolvable:$true] %s115_s12 }
  0x17   :  { %121 = dma.hbm_to_vmem [thread:$0]  %s114_s17, 2048, %s116_s12, [#allocation12], %s1759_s29, %s1759_s29, %s1760_s30  }
  0x18   :  { %1746 = dma.done.wait [#allocation3], 128  }
  0x19   :  { %1747 = vsyncadd [#allocation3], 4294967168 }
  0x1a   :  { %1748 = dma.done.wait [#allocation6], 3072  }
  0x1b   :  { %1749 = vsyncadd [#allocation6], 4294964224 }
  0x1c   :  { %1750 = dma.done.wait [#allocation9], 2048  }
  0x1d   :  { %1751 = vsyncadd [#allocation9], 4294965248 }
  0x1e   :  { %1752 = dma.done.wait [#allocation12], 2048  }
  0x1f   :  { %1753 = vsyncadd [#allocation12], 4294965248  ;;  %v1766_v0 = vmov 0   ;;  %v1168_v1 = vld [vmem:[%s2111_s5 + $0x10] sm:$0xff]  ;;  %v157_v2 = vld [vmem:[%s2111_s5] sm:$0xff]  ;;  %vm477_vm0 = vcmask 1043456  }
  0x20   :  { %1546 = vset.pattern.permute.xlu1 %v1766_v0  ;;  %1545 = vset.pattern.permute.xlu0 %v1766_v0  ;;  %v1169_v3 = vld [vmem:[%s2111_s5 + $0x18] sm:$0xff]  ;;  %v158_v4 = vld [vmem:[%s2111_s5 + $0x8] sm:$0xff]  ;;  %v165_v5 = vld [vmem:[%s2112_s6] sm:$0xff]  ;;  %vm195_vm1 = vcmask 130048   ;;  %vm470_vm2 = vcmask 195584   ;;  %s1767_s17 = smov [#allocation13]  }
  0x21   :  { %1547 = vset.pattern.permute.xlu2 %v1766_v0  ;;  %310 = vperm.xlu1 %1546, %v1168_v1   ;;  %v1173_v6 = vld [vmem:[%s2112_s6 + $0x20] sm:$0xff]  ;;  %v166_v7 = vld [vmem:[%s2112_s6 + $0x8] sm:$0xff]  ;;  %v167_v8 = vld [vmem:[%s2112_s6 + $0x10] sm:$0xff]  ;;  %s1132_s19 = sshll.u32 %s1767_s17, 4  ;;  %s1768_s20 = smov 128   ;;  %s1133_s19 = int_to_ptr.vmem [resolvable:$true] %s1132_s19 }
  0x22   :  { %179 = vperm.xlu0 %1545, %v157_v2   ;;  %v1170_v9 = vld [vmem:[%s2111_s5 + $0x20] sm:$0xff]  ;;  %v1171_v12 = vld [vmem:[%s2111_s5 + $0x28] sm:$0xff]  ;;  %v176_v13 = vld [vmem:[%s2110_s4 + $0x10] sm:$0xff]  ;;  %s1769_s12 = smov 8  }
  0x23   :  { %215 = vperm.xlu2 %1547, %v1170_v9   ;;  %v172_v14 = vld [vmem:[%s2109_s3] sm:$0xff]  ;;  %v173_v15 = vld [vmem:[%s2109_s3 + $0x8] sm:$0xff]  ;;  %v1172_v16 = vld [vmem:[%s2112_s6 + $0x18] sm:$0xff]  ;;  %v1939_v18 = vpack.c.bf16 %v176_v13, %v176_v13 }
  0x24   :  { %v174_v27 = vld [vmem:[%s2110_s4] sm:$0xff]  ;;  %v175_v28 = vld [vmem:[%s2110_s4 + $0x8] sm:$0xff]  ;;  %v1467_v40 = vld [vmem:[%s2113_s7 + $0x38] sm:$0xff] }
  0x25   :  { %v479_v26 = vsel %vm477_vm0, %v1939_v18, 0  ;;  %v1956_v29 = vld [vmem:[#allocation2] sm:$0xff]  ;;  %v1963_v31 = vpack.c.bf16 %v175_v28, %v174_v27  ;;  %v1174_v32 = vld [vmem:[%s2112_s6 + $0x28] sm:$0xff]  ;;  %294 = vmatpush.bf16.msra.mxu1 %v1467_v40  ;;  %v1466_v41 = vld [vmem:[%s2113_s7 + $0x30] sm:$0xff] }
  0x26   :  { %v1961_v30 = vld [vmem:[%s2107_s1] sm:$0xff]  ;;  %v153_v33 = vld [vmem:[%s2107_s1 + $0x8] sm:$0xf]  ;;  %v1474_v45 = vld [vmem:[#allocation5 + $0x30] sm:$0xff]  ;;  %s1134_s1 = sshll.u32 %s2121_s15, 4  ;;  %s1770_s15 = smov [#allocation14]   ;;  %s1135_s1 = int_to_ptr.hbm [resolvable:$true] %s1134_s1 }
  0x27   :  { %v326_v34 = vunpack.c.l.b16 %v153_v33  ;;  %v1981_v36 = vld [vmem:[%s2108_s2] sm:$0xff]  ;;  %v156_v37 = vld [vmem:[%s2108_s2 + $0x8] sm:$0xf]  ;;  %v1482_v47 = vld [vmem:[#allocation7 + $0x30] sm:$0xff]  ;;  %s1145_s22 = sshll.u32 %s1770_s15, 4  ;;  %s1146_s22 = int_to_ptr.vmem [resolvable:$true] %s1145_s22 }
  0x28   :  { %v467_v38 = vunpack.c.l.b16 %v156_v37  ;;  %v1475_v42 = vld [vmem:[#allocation5 + $0x38] sm:$0xff]  ;;  %v1465_v43 = vld [vmem:[%s2113_s7 + $0x28] sm:$0xff]  ;;  %v1473_v48 = vld [vmem:[#allocation5 + $0x28] sm:$0xff] }
  0x29   :  { %315 = vperm.xlu1 %1546, %v1169_v3   ;;  %v1976_v35 = vpack.c.b16 %v326_v34, %v326_v34  ;;  %295 = vmatpush.bf16.msra.mxu1 %v1466_v41  ;;  %v1483_v44 = vld [vmem:[#allocation7 + $0x38] sm:$0xff]  ;;  %v1463_v50 = vld [vmem:[%s2113_s7 + $0x18] sm:$0xff]  ;;  %v1481_v51 = vld [vmem:[#allocation7 + $0x28] sm:$0xff] }
  0x2a   :  { %184 = vperm.xlu0 %1545, %v158_v4   ;;  %v1990_v39 = vpack.c.b16 %v467_v38, %v467_v38  ;;  %442 = vmatpush.bf16.msra.mxu3 %v1475_v42  ;;  %v1464_v46 = vld [vmem:[%s2113_s7 + $0x20] sm:$0xff]  ;;  %v1472_v52 = vld [vmem:[#allocation5 + $0x20] sm:$0xff]  ;;  %v1462_v53 = vld [vmem:[%s2113_s7 + $0x10] sm:$0xff] }
  0x2b   :  { %220 = vperm.xlu2 %1547, %v1171_v12   ;;  %v1491_v49 = vld [vmem:[#allocation7 + $0x78] sm:$0xff]  ;;  %v1480_v54 = vld [vmem:[#allocation7 + $0x20] sm:$0xff]  ;;  %v1490_v55 = vld [vmem:[#allocation7 + $0x70] sm:$0xff] }
  0x2c   :  { %v1471_v56 = vld [vmem:[#allocation5 + $0x18] sm:$0xff]  ;;  %v1461_v57 = vld [vmem:[%s2113_s7 + $0x8] sm:$0xff]  ;;  %v1489_v59 = vld [vmem:[#allocation7 + $0x68] sm:$0xff] }
  0x2d   :  { %296 = vmatpush.bf16.msra.mxu1 %v1465_v43  ;;  %v1479_v58 = vld [vmem:[#allocation7 + $0x18] sm:$0xff]  ;;  %v1470_v60 = vld [vmem:[#allocation5 + $0x10] sm:$0xff]  ;;  %v1488_v63 = vld [vmem:[#allocation7 + $0x60] sm:$0xff] }
  0x2e   :  { %443 = vmatpush.bf16.msra.mxu3 %v1474_v45  ;;  %v1460_v61 = vld [vmem:[%s2113_s7] sm:$0xff]  ;;  %v1478_v62 = vld [vmem:[#allocation7 + $0x10] sm:$0xff]  ;;  %v1469_v0 = vld [vmem:[#allocation5 + $0x8] sm:$0xff] }
  0x2f   :  { %v1477_v1 = vld [vmem:[#allocation7 + $0x8] sm:$0xff]  ;;  %v1487_v2 = vld [vmem:[#allocation7 + $0x58] sm:$0xff]  ;;  %v1468_v3 = vld [vmem:[#allocation5] sm:$0xff] }
  0x30   :  { %v1476_v4 = vld [vmem:[#allocation7] sm:$0xff] }
  0x31   :  { %360 = vperm.xlu1 %1546, %v166_v7   ;;  %297 = vmatpush.bf16.msra.mxu1 %v1464_v46  ;;  %v1484_v7 = vld [vmem:[#allocation7 + $0x40] sm:$0xff] }
  0x32   :  { %355 = vperm.xlu0 %1545, %v165_v5   ;;  %444 = vmatpush.bf16.msra.mxu3 %v1473_v48  ;;  %v1486_v5 = vld [vmem:[#allocation7 + $0x50] sm:$0xff]  ;;  %v1515_v48 = vld [vmem:[#allocation11 + $0x38] sm:$0xff] }
  0x33   :  { %501 = vperm.xlu2 %1547, %v1172_v16  }
  0x35   :  { %298 = vmatpush.bf16.msra.mxu1 %v1463_v50  ;;  %v1513_v50 = vld [vmem:[#allocation11 + $0x28] sm:$0xff] }
  0x36   :  { %445 = vmatpush.bf16.msra.mxu3 %v1472_v52  ;;  %v1512_v52 = vld [vmem:[#allocation11 + $0x20] sm:$0xff] }
  0x39   :  { %365 = vperm.xlu1 %1546, %v167_v8   ;;  %299 = vmatpush.bf16.msra.mxu1 %v1462_v53 }
  0x3a   :  { %506 = vperm.xlu0 %1545, %v1173_v6   ;;  %446 = vmatpush.bf16.msra.mxu3 %v1471_v56  ;;  %v1485_v6 = vld [vmem:[#allocation7 + $0x48] sm:$0xff] }
  0x3b   :  { %511 = vperm.xlu2 %1547, %v1174_v32   ;;  %v1497_v56 = vld [vmem:[#allocation8 + $0x28] sm:$0xff] }
  0x3d   :  { %300 = vmatpush.bf16.msra.mxu1 %v1461_v57  ;;  %v1510_v57 = vld [vmem:[#allocation11 + $0x10] sm:$0xff] }
  0x3e   :  { %447 = vmatpush.bf16.msra.mxu3 %v1470_v60  ;;  %v1509_v60 = vld [vmem:[#allocation11 + $0x8] sm:$0xff] }
  0x41   :  { %301 = vmatpush.bf16.msra.mxu1 %v1460_v61  ;;  %v1495_v61 = vld [vmem:[#allocation8 + $0x18] sm:$0xff] }
  0x42   :  { %448 = vmatpush.bf16.msra.mxu3 %v1469_v0  ;;  %v1494_v0 = vld [vmem:[#allocation8 + $0x10] sm:$0xff] }
  0x46   :  { %449 = vmatpush.bf16.msra.mxu3 %v1468_v3  ;;  %v1493_v3 = vld [vmem:[#allocation8 + $0x8] sm:$0xff] }
  0x7d   :  { %v2019_v8 = vpop.permute.xlu2 %215 }
  0x85   :  { %v2022_v13 = vpop.permute.xlu2 %220 }
  0x93   :  { %v1919_v10 = vpop.permute.xlu1 %310 }
  0x94   :  { %v1921_v11 = vpop.permute.xlu0 %179  ;;  %v318_v17 = vmul.f32 %v1919_v10, %v172_v14 }
  0x95   :  { %v187_v21 = vmul.f32 %v1921_v11, %v172_v14 }
  0x9b   :  { %v1941_v19 = vpop.permute.xlu1 %315 }
  0x9c   :  { %v1943_v20 = vpop.permute.xlu0 %184  ;;  %v319_v22 = vmul.f32 %v1941_v19, %v173_v15 }
  0x9d   :  { %v188_v23 = vmul.f32 %v1943_v20, %v173_v15 }
  0x9e   :  { %v320_v25 = vpack.c.bf16 %v319_v22, %v318_v17 }
  0x9f   :  { %v189_v24 = vpack.c.bf16 %v188_v23, %v187_v21 }
  0xa0   :  { %342 = vmatpush.bf16.msra.mxu2 %v320_v25 }
  0xa1   :  { %206 = vmatpush.bf16.msra.mxu0 %v189_v24 }
  0xa3   :  { %1216 = vmatmul.msk.bf16.vlgmr.msra.gmra.mxu2 %vm195_vm1, %v1961_v30  ;;  %v2028_v22 = vpop.permute.xlu1 %360 }
  0xa4   :  { %1179 = vmatmul.msk.bf16.vlgmr.msra.gmra.mxu0 %vm195_vm1, %v1956_v29  ;;  %581 = vmatpush.bf16.msrb.mxu2 %v1483_v44  ;;  %v2026_v21 = vpop.permute.xlu0 %355 }
  0xa5   :  { %487 = vmatpush.bf16.msrb.mxu0 %v479_v26 }
  0xa8   :  { %582 = vmatpush.bf16.msrb.mxu2 %v1482_v47 }
  0xa9   :  { %488 = vmatpush.bf16.msrb.mxu0 %v1963_v31 }
  0xab   :  { %v2038_v38 = vpop.permute.xlu1 %365 }
  0xac   :  { %583 = vmatpush.bf16.msrb.mxu2 %v1481_v51  ;;  %v2032_v28 = vpop.permute.xlu0 %506  ;;  %v1499_v51 = vld [vmem:[#allocation8 + $0x38] sm:$0xff] }
  0xad   :  { %668 = vmatpush.bf16.msra.mxu0 %v1491_v49  ;;  %v1514_v49 = vld [vmem:[#allocation11 + $0x30] sm:$0xff]  ;;  %790 = vmatpush.bf16.msrb.mxu3 %v1499_v51 }
  0xb0   :  { %584 = vmatpush.bf16.msrb.mxu2 %v1480_v54  ;;  %v1498_v54 = vld [vmem:[#allocation8 + $0x30] sm:$0xff] }
  0xb1   :  { %669 = vmatpush.bf16.msra.mxu0 %v1490_v55  ;;  %v1511_v55 = vld [vmem:[#allocation11 + $0x18] sm:$0xff]  ;;  %791 = vmatpush.bf16.msrb.mxu3 %v1498_v54 }
  0xb3   :  { %1217 = vmatmul.msk.bf16.gmra.mxu2 %vm195_vm1, %v1976_v35 }
  0xb4   :  { %1255 = vmatmul.msk.bf16.vlgmr.msrb.gmra.mxu0 %vm470_vm2, %v1981_v36  ;;  %585 = vmatpush.bf16.msrb.mxu2 %v1479_v58 }
  0xb5   :  { %670 = vmatpush.bf16.msra.mxu0 %v1489_v59  ;;  %792 = vmatpush.bf16.msrb.mxu3 %v1497_v56  ;;  %v1496_v59 = vld [vmem:[#allocation8 + $0x20] sm:$0xff] }
  0xb8   :  { %586 = vmatpush.bf16.msrb.mxu2 %v1478_v62  ;;  %v1508_v62 = vld [vmem:[#allocation11] sm:$0xff] }
  0xb9   :  { %671 = vmatpush.bf16.msra.mxu0 %v1488_v63  ;;  %793 = vmatpush.bf16.msrb.mxu3 %v1496_v59  ;;  %v1505_v59 = vld [vmem:[#allocation10 + $0x28] sm:$0xff] }
  0xbc   :  { %587 = vmatpush.bf16.msrb.mxu2 %v1477_v1  ;;  %v1548_v1 = vld [vmem:[%s2116_s10] ss:$0 sm:$0xff] }
  0xbd   :  { %672 = vmatpush.bf16.msra.mxu0 %v1487_v2  ;;  %794 = vmatpush.bf16.msrb.mxu3 %v1495_v61  ;;  %v1503_v61 = vld [vmem:[#allocation10 + $0x18] sm:$0xff] }
  0xc0   :  { %588 = vmatpush.bf16.msrb.mxu2 %v1476_v4 }
  0xc1   :  { %673 = vmatpush.bf16.msra.mxu0 %v1486_v5  ;;  %795 = vmatpush.bf16.msrb.mxu3 %v1494_v0 }
  0xc3   :  { %589 = vmatmul.bf16.vlgmr.msrb.gmra.mxu2 %v1963_v31  ;;  %v2034_v31 = vpop.permute.xlu2 %501 }
  0xc4   :  { %1256 = vmatmul.msk.bf16.gmra.mxu0 %vm470_vm2, %v1990_v39 }
  0xc5   :  { %674 = vmatpush.bf16.msra.mxu0 %v1485_v6  ;;  %796 = vmatpush.bf16.msrb.mxu3 %v1493_v3  ;;  %v1492_v6 = vld [vmem:[#allocation8] sm:$0xff] }
  0xc9   :  { %675 = vmatpush.bf16.msra.mxu0 %v1484_v7  ;;  %797 = vmatpush.bf16.msrb.mxu3 %v1492_v6 }
  0xcb   :  { %v2041_v44 = vpop.permute.xlu2 %511 }
  0xcd   :  { %1007 = vmatpush.bf16.msrb.mxu0 %v1515_v48 }
  0xd1   :  { %1008 = vmatpush.bf16.msrb.mxu0 %v1514_v49 }
  0xd3   :  { %594 = vmatmul.bf16.gmra.mxu2 %v1939_v18 }
  0xd5   :  { %1009 = vmatpush.bf16.msrb.mxu0 %v1513_v50 }
  0xd9   :  { %1010 = vmatpush.bf16.msrb.mxu0 %v1512_v52 }
  0xdd   :  { %1011 = vmatpush.bf16.msrb.mxu0 %v1511_v55 }
  0xe1   :  { %1012 = vmatpush.bf16.msrb.mxu0 %v1510_v57 }
  0xe5   :  { %1013 = vmatpush.bf16.msrb.mxu0 %v1509_v60  ;;  %v1504_v60 = vld [vmem:[#allocation10 + $0x20] sm:$0xff] }
  0xe9   :  { %1014 = vmatpush.bf16.msrb.mxu0 %v1508_v62  ;;  %v1501_v62 = vld [vmem:[#allocation10 + $0x8] sm:$0xff] }
 0x121   :  { %v208_v9 = vpop.f32.mrf.mxu0 }
 0x122   :  { %v223_v15 = vmul.f32 %v2019_v8, %v208_v9 }
 0x126   :  { %v344_v12 = vpop.f32.mrf.mxu2 }
 0x127   :  { %v368_v24 = vmul.f32 %v2026_v21, %v344_v12 }
 0x129   :  { %v210_v14 = vpop.f32.mrf.mxu0 }
 0x12a   :  { %v224_v16 = vmul.f32 %v2022_v13, %v210_v14  ;;  %v1549_v14 = vld [vmem:[%s2116_s10 + $0x1] ss:$0 sm:$0xff] }
 0x12c   :  { %v225_v17 = vpack.c.bf16 %v224_v16, %v223_v15 }
 0x12e   :  { %302 = vmatmul.bf16.vlgmr.msra.gmra.mxu1 %v225_v17  ;;  %v346_v23 = vpop.f32.mrf.mxu2 }
 0x12f   :  { %v369_v25 = vmul.f32 %v2028_v22, %v346_v23 }
 0x131   :  { %v490_v18 = vpop.f32.mrf.mxu0  ;;  %v371_v26 = vpack.c.bf16 %v369_v25, %v368_v24 }
 0x132   :  { %v514_v33 = vmul.f32 %v2034_v31, %v490_v18 }
 0x133   :  { %450 = vmatmul.bf16.vlgmr.msra.gmra.mxu3 %v371_v26 }
 0x136   :  { %v349_v27 = vpop.f32.mrf.mxu2 }
 0x137   :  { %v370_v40 = vmul.f32 %v2038_v38, %v349_v27 }
 0x139   :  { %v492_v32 = vpop.f32.mrf.mxu0  ;;  %v372_v43 = vpack.c.bf16 %v370_v40, %v370_v40 }
 0x13a   :  { %v515_v34 = vmul.f32 %v2032_v28, %v492_v32 }
 0x13c   :  { %v602_v37 = vpack.c.bf16 %v515_v34, %v514_v33 }
 0x13e   :  { %676 = vmatmul.bf16.vlgmr.msra.gmra.mxu0 %v602_v37  ;;  %v351_v41 = vpop.f32.mrf.mxu2  ;;  %v1507_v37 = vld [vmem:[#allocation10 + $0x38] sm:$0xff] }
 0x13f   :  { %899 = vmatpush.bf16.msra.mxu2 %v1507_v37 }
 0x141   :  { %v495_v42 = vpop.f32.mrf.mxu0 }
 0x142   :  { %v516_v45 = vmul.f32 %v2041_v44, %v495_v42 }
 0x143   :  { %455 = vmatmul.bf16.gmra.mxu3 %v372_v43 }
 0x144   :  { %v603_v47 = vpack.c.bf16 %v516_v45, %v516_v45 }
 0x146   :  { %v590_v53 = vpop.f32.mrf.mxu2 }
 0x149   :  { %v497_v46 = vpop.f32.mrf.mxu0 }
 0x14e   :  { %681 = vmatmul.bf16.gmra.mxu0 %v603_v47  ;;  %v592_v58 = vpop.f32.mrf.mxu2 }
 0x156   :  { %v595_v63 = vpop.f32.mrf.mxu2 }
 0x15e   :  { %v597_v5 = vpop.f32.mrf.mxu2 }
 0x15f   :  { %v1523_v5 = vld [vmem:[#allocation11 + $0x78] sm:$0xff] }
 0x1ab   :  { %v303_v2 = vpop.f32.mrf.mxu1 }
 0x1ac   :  { %v304_v4 = vadd.f32 %v1548_v1, %v303_v2 }
 0x1ae   :  { %v697_v7 = vmax.f32 %v304_v4, 0.0 }
 0x1b0   :  { %v702_v16 = vmul.f32 %v697_v7, %v1921_v11  ;;  %v804_v23 = vmul.f32 %v697_v7, %v1919_v10  ;;  %v1550_v10 = vld [vmem:[%s2116_s10 + $0x2] ss:$0 sm:$0xff] }
 0x1b3   :  { %v305_v9 = vpop.f32.mrf.mxu1 }
 0x1b4   :  { %v306_v12 = vadd.f32 %v1548_v1, %v305_v9 }
 0x1b6   :  { %v698_v15 = vmax.f32 %v306_v12, 0.0  ;;  %v451_v17 = vpop.f32.mrf.mxu3 }
 0x1b7   :  { %v452_v18 = vadd.f32 %v1549_v14, %v451_v17 }
 0x1b8   :  { %v703_v24 = vmul.f32 %v698_v15, %v1943_v20  ;;  %v805_v25 = vmul.f32 %v698_v15, %v1941_v19 }
 0x1b9   :  { %v599_v33 = vadd.f32 %v590_v53, %v452_v18  ;;  %v1518_v18 = vld [vmem:[#allocation11 + $0x50] sm:$0xff] }
 0x1ba   :  { %v806_v26 = vpack.c.bf16 %v805_v25, %v804_v23  ;;  %v704_v27 = vpack.c.bf16 %v703_v24, %v702_v16  ;;  %v1520_v25 = vld [vmem:[#allocation11 + $0x60] sm:$0xff] }
 0x1bb   :  { %v677_v32 = vpop.f32.mrf.mxu0 }
 0x1bc   :  { %712 = vmatpush.bf16.msrb.mxu1 %v704_v27  ;;  %v686_v11 = vadd.f32 %v677_v32, %v599_v33 }
 0x1be   :  { %v453_v34 = vpop.f32.mrf.mxu3  ;;  %v694_v41 = vadd.f32 %v1550_v10, %v686_v11 }
 0x1bf   :  { %1322 = vmatmul.msk.bf16.vlgmr.msrb.gmra.mxu1 %vm195_vm1, %v1956_v29  ;;  %v454_v20 = vadd.f32 %v1549_v14, %v453_v34 }
 0x1c0   :  { %814 = vmatpush.bf16.msra.mxu1 %v806_v26  ;;  %v699_v46 = vmax.f32 %v694_v41, 0.0  ;;  %v1516_v26 = vld [vmem:[#allocation11 + $0x40] sm:$0xff] }
 0x1c1   :  { %v600_v19 = vadd.f32 %v592_v58, %v454_v20  ;;  %v1506_v58 = vld [vmem:[#allocation10 + $0x30] sm:$0xff] }
 0x1c2   :  { %900 = vmatpush.bf16.msra.mxu2 %v1506_v58 }
 0x1c3   :  { %v679_v40 = vpop.f32.mrf.mxu0 }
 0x1c4   :  { %v687_v42 = vadd.f32 %v679_v40, %v600_v19  ;;  %1094 = vmatpush.bf16.msrb.mxu1 %v1523_v5 }
 0x1c6   :  { %v695_v43 = vadd.f32 %v1550_v10, %v687_v42  ;;  %v456_v45 = vpop.f32.mrf.mxu3  ;;  %901 = vmatpush.bf16.msra.mxu2 %v1505_v59 }
 0x1c7   :  { %v457_v48 = vadd.f32 %v1549_v14, %v456_v45 }
 0x1c8   :  { %v700_v47 = vmax.f32 %v695_v43, 0.0 }
 0x1c9   :  { %v601_v50 = vadd.f32 %v595_v63, %v457_v48  ;;  %v1500_v63 = vld [vmem:[#allocation10] sm:$0xff] }
 0x1ca   :  { %v917_v49 = vpack.c.bf16 %v700_v47, %v699_v46  ;;  %902 = vmatpush.bf16.msra.mxu2 %v1504_v60 }
 0x1cb   :  { %v682_v29 = vpop.f32.mrf.mxu0 }
 0x1cc   :  { %v688_v51 = vadd.f32 %v682_v29, %v601_v50  ;;  %1015 = vmatmul.bf16.vlgmr.msrb.gmra.mxu0 %v917_v49 }
 0x1ce   :  { %v696_v52 = vadd.f32 %v1550_v10, %v688_v51  ;;  %v458_v53 = vpop.f32.mrf.mxu3  ;;  %903 = vmatpush.bf16.msra.mxu2 %v1503_v61 }
 0x1cf   :  { %1355 = vmatmul.msk.bf16.vlgmr.msra.gmra.mxu1 %vm195_vm1, %v1961_v30  ;;  %v1502_v30 = vld [vmem:[#allocation10 + $0x10] sm:$0xff] }
 0x1d0   :  { %v701_v54 = vmax.f32 %v696_v52, 0.0 }
 0x1d2   :  { %v918_v55 = vpack.c.bf16 %v701_v54, %v701_v54  ;;  %904 = vmatpush.bf16.msra.mxu2 %v1502_v30 }
 0x1d3   :  { %v684_v56 = vpop.f32.mrf.mxu0 }
 0x1d4   :  { %v920_v57 = vsel %vm477_vm0, %v918_v55, 0 }
 0x1d5   :  { %928 = vmatpush.bf16.msra.mxu3 %v920_v57 }
 0x1d6   :  { %905 = vmatpush.bf16.msra.mxu2 %v1501_v62 }
 0x1d9   :  { %929 = vmatpush.bf16.msra.mxu3 %v917_v49  ;;  %v1553_v49 = vld [vmem:[%s2120_s14 + $0x2] ss:$0 sm:$0xff] }
 0x1da   :  { %906 = vmatpush.bf16.msra.mxu2 %v1500_v63 }
 0x1dc   :  { %1020 = vmatmul.bf16.gmra.mxu0 %v918_v55 }
 0x1de   :  { %1524 = vmatpush.bf16.msrb.mxu2 %v1523_v5 }
 0x1df   :  { %1356 = vmatmul.msk.bf16.gmra.mxu1 %vm195_vm1, %v1976_v35 }
 0x23c   :  { %v714_v0 = vpop.f32.mrf.mxu1 }
 0x23d   :  { %v719_v2 = vmul.f32 %v714_v0, %v2019_v8 }
 0x244   :  { %v716_v1 = vpop.f32.mrf.mxu1 }
 0x245   :  { %v720_v35 = vmul.f32 %v716_v1, %v2022_v13 }
 0x247   :  { %v721_v3 = vpack.c.bf16 %v720_v35, %v719_v2 }
 0x249   :  { %798 = vmatmul.bf16.vlgmr.msrb.gmra.mxu3 %v721_v3  ;;  %v2066_v4 = vpop.f32.mrf.mxu0 }
 0x24c   :  { %v816_v6 = vpop.f32.mrf.mxu1 }
 0x24d   :  { %v825_v12 = vmul.f32 %v816_v6, %v2026_v21  ;;  %v1522_v21 = vld [vmem:[#allocation11 + $0x70] sm:$0xff] }
 0x24e   :  { %1095 = vmatpush.bf16.msrb.mxu1 %v1522_v21  ;;  %1525 = vmatpush.bf16.msrb.mxu2 %v1522_v21 }
 0x251   :  { %v2068_v7 = vpop.f32.mrf.mxu0 }
 0x254   :  { %v818_v9 = vpop.f32.mrf.mxu1 }
 0x255   :  { %v826_v14 = vmul.f32 %v818_v9, %v2028_v22  ;;  %v1521_v22 = vld [vmem:[#allocation11 + $0x68] sm:$0xff] }
 0x256   :  { %1096 = vmatpush.bf16.msrb.mxu1 %v1521_v22  ;;  %1526 = vmatpush.bf16.msrb.mxu2 %v1521_v22 }
 0x257   :  { %v828_v15 = vpack.c.bf16 %v826_v14, %v825_v12 }
 0x259   :  { %907 = vmatmul.bf16.vlgmr.msra.gmra.mxu2 %v828_v15  ;;  %1390 = vmatmul.msk.bf16.vlgmr.msra.gmra.mxu3 %vm470_vm2, %v1981_v36  ;;  %v2074_v8 = vpop.f32.mrf.mxu0  ;;  %v1519_v36 = vld [vmem:[#allocation11 + $0x58] sm:$0xff] }
 0x25a   :  { %1097 = vmatpush.bf16.msrb.mxu1 %v1520_v25  ;;  %1527 = vmatpush.bf16.msrb.mxu2 %v1520_v25 }
 0x25c   :  { %v821_v13 = vpop.f32.mrf.mxu1 }
 0x25d   :  { %v827_v17 = vmul.f32 %v821_v13, %v2038_v38  ;;  %v1517_v38 = vld [vmem:[#allocation11 + $0x48] sm:$0xff] }
 0x25e   :  { %1098 = vmatpush.bf16.msrb.mxu1 %v1519_v36  ;;  %1528 = vmatpush.bf16.msrb.mxu2 %v1519_v36 }
 0x25f   :  { %v829_v24 = vpack.c.bf16 %v827_v17, %v827_v17 }
 0x261   :  { %v1023_v16 = vpop.f32.mrf.mxu0 }
 0x262   :  { %1099 = vmatpush.bf16.msrb.mxu1 %v1518_v18  ;;  %1529 = vmatpush.bf16.msrb.mxu2 %v1518_v18 }
 0x264   :  { %v823_v23 = vpop.f32.mrf.mxu1 }
 0x266   :  { %1100 = vmatpush.bf16.msrb.mxu1 %v1517_v38  ;;  %1530 = vmatpush.bf16.msrb.mxu2 %v1517_v38 }
 0x269   :  { %912 = vmatmul.bf16.gmra.mxu2 %v829_v24  ;;  %1391 = vmatmul.msk.bf16.gmra.mxu3 %vm470_vm2, %v1990_v39  ;;  %v1551_v39 = vld [vmem:[%s2120_s14] ss:$0 sm:$0xff] }
 0x26a   :  { %1101 = vmatpush.bf16.msrb.mxu1 %v1516_v26  ;;  %1531 = vmatpush.bf16.msrb.mxu2 %v1516_v26 }
 0x2cc   :  { %v799_v27 = vpop.f32.mrf.mxu3 }
 0x2cd   :  { %v800_v32 = vadd.f32 %v1551_v39, %v799_v27 }
 0x2cf   :  { %1123 = vst [vmem:[#allocation13] sm:$0xff] %v800_v32 }
 0x2d4   :  { %v801_v33 = vpop.f32.mrf.mxu3 }
 0x2d5   :  { %v802_v34 = vadd.f32 %v1551_v39, %v801_v33 }
 0x2d7   :  { %1124 = vst [vmem:[#allocation13 + $0x8] sm:$0xff] %v802_v34 }
 0x2d8   :  { %1140 = dma.vmem_to_hbm [thread:$0]  %s1133_s19, 256, %s1135_s1, [#allocation4], %s1768_s20, %s1768_s20, %s1769_s12  }
 0x2dc   :  { %v908_v37 = vpop.f32.mrf.mxu2  ;;  %v931_v11 = vpop.f32.mrf.mxu3 }
 0x2dd   :  { %v940_v19 = vmul.f32 %v931_v11, %v2034_v31 }
 0x2e4   :  { %v910_v10 = vpop.f32.mrf.mxu2  ;;  %v933_v20 = vpop.f32.mrf.mxu3 }
 0x2e5   :  { %v941_v40 = vmul.f32 %v933_v20, %v2032_v28  ;;  %v1552_v28 = vld [vmem:[%s2120_s14 + $0x1] ss:$0 sm:$0xff]  ;;  %s1147_s14 = sshll.u32 %s2122_s16, 4  ;;  %s1148_s14 = int_to_ptr.hbm [resolvable:$true] %s1147_s14 }
 0x2e6   :  { %v909_v31 = vadd.f32 %v1552_v28, %v908_v37  ;;  %v911_v51 = vadd.f32 %v1552_v28, %v910_v10 }
 0x2e7   :  { %v1028_v41 = vpack.c.bf16 %v941_v40, %v940_v19 }
 0x2e8   :  { %v1026_v53 = vadd.f32 %v2068_v7, %v911_v51 }
 0x2e9   :  { %1102 = vmatmul.bf16.vlgmr.msrb.gmra.mxu1 %v1028_v41 }
 0x2ec   :  { %v913_v42 = vpop.f32.mrf.mxu2  ;;  %v936_v43 = vpop.f32.mrf.mxu3 }
 0x2ed   :  { %v942_v45 = vmul.f32 %v936_v43, %v2041_v44  ;;  %v1025_v44 = vadd.f32 %v2066_v4, %v909_v31  ;;  %v914_v55 = vadd.f32 %v1552_v28, %v913_v42 }
 0x2ef   :  { %v1029_v46 = vpack.c.bf16 %v942_v45, %v942_v45  ;;  %v1027_v58 = vadd.f32 %v2074_v8, %v914_v55 }
 0x2f1   :  { %1107 = vmatmul.bf16.vlgmr.msrb.gmra.mxu2 %v1029_v46 }
 0x2f4   :  { %v915_v47 = vpop.f32.mrf.mxu2  ;;  %v938_v48 = vpop.f32.mrf.mxu3 }
 0x366   :  { %v1103_v50 = vpop.f32.mrf.mxu1 }
 0x367   :  { %v1112_v29 = vadd.f32 %v1103_v50, %v1025_v44 }
 0x369   :  { %v1120_v52 = vadd.f32 %v1553_v49, %v1112_v29 }
 0x36b   :  { %1125 = vst [vmem:[#allocation14] sm:$0xff] %v1120_v52 }
 0x36e   :  { %v1105_v54 = vpop.f32.mrf.mxu1 }
 0x36f   :  { %v1113_v56 = vadd.f32 %v1105_v54, %v1026_v53 }
 0x371   :  { %v1121_v57 = vadd.f32 %v1553_v49, %v1113_v56 }
 0x373   :  { %1126 = vst [vmem:[#allocation14 + $0x8] sm:$0xff] %v1121_v57 }
 0x374   :  { %v1108_v59 = vpop.f32.mrf.mxu2 }
 0x375   :  { %v1114_v60 = vadd.f32 %v1108_v59, %v1027_v58 }
 0x377   :  { %v1122_v61 = vadd.f32 %v1553_v49, %v1114_v60 }
 0x379   :  { %1127 = vst [vmem:[#allocation14 + $0x10] sm:$0xff] %v1122_v61 }
 0x37a   :  { %1153 = dma.vmem_to_hbm [thread:$0]  %s1146_s22, 384, %s1148_s14, [#allocation15], %s1768_s20, %s1768_s20, %s1769_s12  }
 0x37c   :  { %v1110_v30 = vpop.f32.mrf.mxu2 }
 0x37d   :  { %1754 = dma.done.wait [#allocation4], 256  }
 0x37e   :  { %1755 = vsyncadd [#allocation4], 4294967040 }
 0x37f   :  { %1756 = dma.done.wait [#allocation15], 384  }
 0x380   :  { %1757 = vsyncadd [#allocation15], 4294966912 }
 0x381   :  { %1162 = vsyncpa [#allocation3], 1 }
 0x382   :  { %1163 = vsyncpa [#allocation6], 1 }
 0x383   :  { %1164 = vsyncpa [#allocation9], 1 }
 0x384   :  { %1165 = vsyncpa [#allocation12], 1 }
 0x385   :  { %1166 = vsyncpa [#allocation4], 1 }
 0x386   :  { %1167 = vsyncpa [#allocation15], 1 }

</bundles_post_ra>
